<compile_context>
chip_gen: v7x
topology: tpu7x:2x2x1
jax: 0.10.0
libtpu: 0.0.40
codegen_flags: <defaults>
</compile_context>

<pallas_src>
import math
import functools

import jax
import jax.numpy as jnp
from jax.experimental import pallas as pl
from jax.experimental.pallas import tpu as pltpu

_EPS = 1e-12  # F.normalize default eps


def _cosface_kernel(xs_ref, wt_ref, lbl_ref, o_ref, *, s, sm, tc, class_axis):
    # xs_ref: (TB, Dp) rows already scaled by s / max(||x||, eps)
    # wt_ref: (Dp, TC) L2-normalized class prototypes, transposed (K, N layout)
    logits = jnp.dot(xs_ref[...], wt_ref[...],
                     preferred_element_type=jnp.float32)      # == s * cosine
    logits = jnp.clip(logits, -s, s)                          # == s * clamp(cos, -1, 1)

    # Cheap margin mask: (TB,1) relative label vs (1,TC) lane iota.
    rel_lbl = lbl_ref[...] - pl.program_id(class_axis) * tc
    lane = jax.lax.broadcasted_iota(jnp.int32, (1, tc), 1)
    margin = jnp.where(rel_lbl == lane, sm, 0.0)              # (TB, TC) f32
    o_ref[...] = (logits - margin).astype(o_ref.dtype)


def _round_up(a, b):
    return (a + b - 1) // b * b


def _pick_tile(n, align, max_tile):
    """Largest tile <= max_tile that is a multiple of `align` (or == n) and,
    if possible, divides n exactly (avoids padding + the post-kernel slice)."""
    if n <= max_tile:
        return n
    t = (max_tile // align) * align
    while t >= align:
        if n % t == 0:
            return t
        t -= align
    return (max_tile // align) * align


def cosface_forward(x, weight, label, *, s=30.0, m=0.4, tb=None, tc=None,
                    compute_dtype=jnp.bfloat16, out_dtype=jnp.float32,
                    vmem_limit_bytes=48 * 1024 * 1024):
    """x: (B, D) f32, weight: (C, D) f32, label: (B,) int -> (B, C) logits."""
    B, D = x.shape
    C, D2 = weight.shape
    assert D == D2
    s = float(s)
    sm = float(s) * float(m)

    # ---- hoisted normalization (tiny XLA ops, run once, not per tile) -------
    # x / max(||x||, eps) == x * rsqrt(max(||x||^2, eps^2)); fold s into it.
    x32 = x.astype(jnp.float32)
    xs = x32 * (s * jax.lax.rsqrt(
        jnp.maximum(jnp.sum(x32 * x32, axis=1, keepdims=True), _EPS * _EPS)))
    w32 = weight.astype(jnp.float32)
    wn = w32 * jax.lax.rsqrt(
        jnp.maximum(jnp.sum(w32 * w32, axis=1, keepdims=True), _EPS * _EPS))

    # ---- tile selection ------------------------------------------------------
    Dp = _round_up(D, 128)                     # lane-full contraction dim
    if tb is None:
        tb = _pick_tile(B, 8, 1024)
    if tc is None:
        tc = _pick_tile(C, 128, 1024)

    comp_bytes = jnp.dtype(compute_dtype).itemsize
    outb = jnp.dtype(out_dtype).itemsize

    def _vmem_use(tb_, tc_):
        # double-buffered blocks + in-kernel f32 logits / mask temporaries
        blocks = (tb_ * Dp * comp_bytes + Dp * tc_ * comp_bytes
                  + tb_ * tc_ * outb + tb_ * 4)
        return 2 * blocks + 3 * tb_ * tc_ * 4

    budget = int(0.85 * vmem_limit_bytes)
    while _vmem_use(tb, tc) > budget:
        if tc >= tb and tc > 128:
            tc = max(128, _round_up(tc // 2, 128))
        elif tb > 8:
            tb = max(8, _round_up(tb // 2, 8))
        else:
            break

    Bp, Cp = _round_up(B, tb), _round_up(C, tc)

    # ---- pad + layout (zero-padding D changes neither norms nor dots) -------
    xs_p = xs if (Bp == B and Dp == D) else jnp.pad(xs, ((0, Bp - B), (0, Dp - D)))
    xs_p = xs_p.astype(compute_dtype)
    wn_p = wn if (Cp == C and Dp == D) else jnp.pad(wn, ((0, Cp - C), (0, Dp - D)))
    wt = wn_p.T.astype(compute_dtype)          # (Dp, Cp) MXU-native RHS
    lbl = label.reshape(B, 1).astype(jnp.int32)
    lbl_p = lbl if Bp == B else jnp.pad(lbl, ((0, Bp - B), (0, 0)),
                                        constant_values=-1)

    # ---- grid order: stream the cheaper operand ------------------------------
    n_bt, n_ct = Bp // tb, Cp // tc
    # class-innermost re-streams W n_bt times; batch-innermost re-streams x n_ct times
    class_inner = n_bt * Cp <= n_ct * Bp
    if class_inner:
        grid = (n_bt, n_ct)
        bt_ax, ct_ax = 0, 1
    else:
        grid = (n_ct, n_bt)
        bt_ax, ct_ax = 1, 0

    in_specs = [
        pl.BlockSpec((tb, Dp), lambda *gi: (gi[bt_ax], 0)),   # scaled/normalized x
        pl.BlockSpec((Dp, tc), lambda *gi: (0, gi[ct_ax])),   # normalized W^T
        pl.BlockSpec((tb, 1), lambda *gi: (gi[bt_ax], 0)),    # labels
    ]
    out_specs = pl.BlockSpec((tb, tc), lambda *gi: (gi[bt_ax], gi[ct_ax]))

    kernel = functools.partial(_cosface_kernel, s=s, sm=sm, tc=tc,
                               class_axis=ct_ax)

    cost = pl.CostEstimate(
        flops=2 * B * C * D,
        transcendentals=0,
        bytes_accessed=int(Bp * Dp * comp_bytes + Dp * Cp * comp_bytes
                           + Bp * Cp * outb + Bp * 4))

    out = pl.pallas_call(
        kernel,
        out_shape=jax.ShapeDtypeStruct((Bp, Cp), out_dtype),
        grid_spec=pl.GridSpec(
            grid=grid,
            in_specs=in_specs,
            out_specs=out_specs,
        ),
        compiler_params=pltpu.CompilerParams(
            dimension_semantics=("parallel", "parallel"),
            vmem_limit_bytes=int(vmem_limit_bytes)),
        cost_estimate=cost,
    )(xs_p, wt, lbl_p)

    if Bp > B or Cp > C:
        out = out[:B, :C]
    return out


def _reference(x, weight, label, s=30.0, m=0.4):
    eps = 1e-12
    xn = x / jnp.maximum(jnp.linalg.norm(x, axis=1, keepdims=True), eps)
    wn = weight / jnp.maximum(jnp.linalg.norm(weight, axis=1, keepdims=True), eps)
    cosine = jnp.clip(xn @ wn.T, -1.0, 1.0)
    one_hot = jax.nn.one_hot(label, weight.shape[0], dtype=jnp.float32)
    return s * (cosine - one_hot * m)


if __name__ == "__main__":
    key = jax.random.PRNGKey(0)
    k_x, k_w, k_l = jax.random.split(key, 3)

    batch = 8
    in_features = 32
    out_features = 16

    # Deterministic inputs / params (xavier_uniform for the weight).
    x = jax.random.normal(k_x, (batch, in_features), dtype=jnp.float32)
    bound = math.sqrt(6.0 / (in_features + out_features))
    weight = jax.random.uniform(
        k_w, (out_features, in_features), minval=-bound, maxval=bound,
        dtype=jnp.float32)
    label = jax.random.randint(k_l, (batch,), 0, out_features, dtype=jnp.int32)

    ref = _reference(x, weight, label, s=30.0, m=0.4)

    # f32 compute path: matches the PyTorch reference to 1e-4.
    out_f32 = cosface_forward(x, weight, label, s=30.0, m=0.4,
                              compute_dtype=jnp.float32)
    out_f32 = jax.block_until_ready(out_f32)
    assert out_f32.shape == (batch, out_features)
    assert jnp.allclose(out_f32, ref, atol=1e-4, rtol=1e-4), "f32 mismatch"

    # Default bf16-matmul fast path (f32 accumulation / epilogue).
    out_bf = cosface_forward(x, weight, label, s=30.0, m=0.4)
    out_bf = jax.block_until_ready(out_bf)
    assert out_bf.shape == (batch, out_features)
    assert jnp.allclose(out_bf, ref, atol=2e-1, rtol=2e-2), "bf16 mismatch"

    print("KERNEL_OK")
</pallas_src>

<mosaic_0001>
module attributes {stable_mosaic.version = 11 : i64} {
  func.func @_cosface_kernel(%arg0: i32, %arg1: i32, %arg2: memref<8x128xf32, #tpu.memory_space<vmem>>, %arg3: memref<128x16xf32, #tpu.memory_space<vmem>>, %arg4: memref<8x1xi32, #tpu.memory_space<vmem>>, %arg5: memref<8x16xf32, #tpu.memory_space<vmem>>) attributes {dimension_semantics = [#tpu.dimension_semantics<parallel>, #tpu.dimension_semantics<parallel>], iteration_bounds = array<i64: 1, 1>, scalar_prefetch = 0 : i64, scratch_operands = 0 : i64, tpu.core_type = #tpu.core_type<tc>, window_params = [{transform_indices = @transform_0, window_bounds = array<i64: 8, 128>}, {transform_indices = @transform_1, window_bounds = array<i64: 128, 16>}, {transform_indices = @transform_2, window_bounds = array<i64: 8, 1>}, {transform_indices = @transform_3, window_bounds = array<i64: 8, 16>}]} {
    %c0 = arith.constant 0 : index
    %c0_0 = arith.constant 0 : index
    %0 = vector.load %arg2[%c0, %c0_0] : memref<8x128xf32, #tpu.memory_space<vmem>>, vector<8x128xf32>
    %c0_1 = arith.constant 0 : index
    %c0_2 = arith.constant 0 : index
    %1 = vector.load %arg3[%c0_1, %c0_2] : memref<128x16xf32, #tpu.memory_space<vmem>>, vector<128x16xf32>
    %cst = arith.constant dense<0.000000e+00> : vector<8x16xf32>
    %2 = tpu.matmul %0, %1, %cst {dimension_numbers = #tpu.dot_dimension_numbers<[1], [0], [0], [1], [0, 0, 1, 1], [], []>} : vector<8x128xf32>, vector<128x16xf32>, vector<8x16xf32> -> vector<8x16xf32>
    %cst_3 = arith.constant -3.000000e+01 : f32
    %cst_4 = arith.constant 3.000000e+01 : f32
    %3 = vector.broadcast %cst_3 : f32 to vector<8x16xf32>
    %4 = arith.maximumf %3, %2 : vector<8x16xf32>
    %5 = vector.broadcast %cst_4 : f32 to vector<8x16xf32>
    %6 = arith.minimumf %5, %4 : vector<8x16xf32>
    %c0_5 = arith.constant 0 : index
    %c0_6 = arith.constant 0 : index
    %7 = vector.load %arg4[%c0_5, %c0_6] : memref<8x1xi32, #tpu.memory_space<vmem>>, vector<8x1xi32>
    %c16_i32 = arith.constant 16 : i32
    %8 = arith.muli %arg0, %c16_i32 : i32
    %9 = vector.broadcast %8 : i32 to vector<8x1xi32>
    %10 = arith.subi %7, %9 : vector<8x1xi32>
    %11 = tpu.iota {dimensions = array<i32: 1>} : vector<1x16xi32>
    %12 = vector.broadcast %10 : vector<8x1xi32> to vector<8x16xi32>
    %13 = vector.broadcast %11 : vector<1x16xi32> to vector<8x16xi32>
    %14 = arith.cmpi eq, %12, %13 : vector<8x16xi32>
    %cst_7 = arith.constant 1.200000e+01 : f32
    %cst_8 = arith.constant 0.000000e+00 : f32
    %15 = vector.broadcast %cst_7 : f32 to vector<8x16xf32>
    %16 = vector.broadcast %cst_8 : f32 to vector<8x16xf32>
    %17 = arith.select %14, %15, %16 : vector<8x16xi1>, vector<8x16xf32>
    %18 = arith.subf %6, %17 : vector<8x16xf32>
    %c0_9 = arith.constant 0 : index
    %c0_10 = arith.constant 0 : index
    %19 = vector.load %arg5[%c0_9, %c0_10] : memref<8x16xf32, #tpu.memory_space<vmem>>, vector<8x16xf32>
    tpu.vector_store %arg5[%c0_9, %c0_10], %18 {strides = array<i32>} : memref<8x16xf32, #tpu.memory_space<vmem>>, vector<8x16xf32>,
    return
  }
  func.func @transform_0(%arg0: i32, %arg1: i32) -> (i32, i32) {
    %c0_i32 = arith.constant 0 : i32
    %c0_i32_0 = arith.constant 0 : i32
    return %arg1, %c0_i32 : i32, i32
  }
  func.func @transform_1(%arg0: i32, %arg1: i32) -> (i32, i32) {
    %c0_i32 = arith.constant 0 : i32
    %c0_i32_0 = arith.constant 0 : i32
    return %c0_i32, %arg0 : i32, i32
  }
  func.func @transform_2(%arg0: i32, %arg1: i32) -> (i32, i32) {
    %c0_i32 = arith.constant 0 : i32
    %c0_i32_0 = arith.constant 0 : i32
    return %arg1, %c0_i32 : i32, i32
  }
  func.func @transform_3(%arg0: i32, %arg1: i32) -> (i32, i32) {
    %c0_i32 = arith.constant 0 : i32
    return %arg1, %arg0 : i32, i32
  }
}

</mosaic_0001>

<bundles_post_ra>
// kernel: tpu_custom_call.1
= control target key start
LH: loop header
LB: loop body
LE: loop exit
PB: predicated region body
PF: predicated region fallthrough
CT: control target
= control target key end

     0   :  { %v239_v3 = vmov 0.0|0.0   ;;  %vm240_vm0 = vmmov 0   ;;  %v241_v6 = vmov 0.0   ;;  %v242_v7 = vmov 0   ;;  %s330_s0 = inlined_call_operand.vmem [shape: f32[8,128], index: 0, kind: input, shape index: {}]   ;;  %s331_s1 = inlined_call_operand.vmem [shape: f32[128,16], index: 1, kind: input, shape index: {}]   ;;  %s332_s2 = inlined_call_operand.vmem [shape: s32[8,1], index: 2, kind: input, shape index: {}]   ;;  %s333_s3 = inlined_call_operand.hbm [shape: f32[8,16], index: 3, kind: output, shape index: {}]  }
   0x1   :  { %v16_v0 = vld [vmem:[%s331_s1] sm:$0xff]  ;;  %v17_v1 = vld [vmem:[%s331_s1 + $0x8] sm:$0xff]  ;;  %v18_v2 = vld [vmem:[%s331_s1 + $0x10] sm:$0xff]  ;;  %185 = vmatprep.subr.bf16.mxu0 %v239_v3  ;;  %182 = vmatprep.mubr.msk.f32.mxu0 %vm240_vm0, %v241_v6 }
   0x2   :  { %v186_v4 = vpack.c.bf16 %v17_v1, %v16_v0  ;;  %v19_v5 = vld [vmem:[%s331_s1 + $0x18] sm:$0xff]  ;;  %214 = vset.pattern.permute.xlu0 %v242_v7  ;;  %v20_v9 = vld [vmem:[%s331_s1 + $0x20] sm:$0xff]  ;;  %v21_v10 = vld [vmem:[%s331_s1 + $0x28] sm:$0xff] }
   0x3   :  { %v189_v8 = vpack.c.bf16 %v19_v5, %v18_v2  ;;  %v104_v11 = vld [vmem:[%s332_s2] sm:$0xff] }
   0x4   :  { %187 = vmatpush3.bf16.msra.mxu0 %v186_v4  ;;  %111 = vperm.xlu0 %214, %v104_v11  }
   0x5   :  { %188 = vmatprep.subr.bf16.mxu0 %v239_v3 }
   0x6   :  { %8 = vsyncpa [#allocation3], 0  ;;  %v192_v12 = vpack.c.bf16 %v21_v10, %v20_v9  ;;  %v22_v13 = vld [vmem:[%s331_s1 + $0x30] sm:$0xff]  ;;  %v23_v14 = vld [vmem:[%s331_s1 + $0x38] sm:$0xff]  ;;  %v108_v29 = vlaneseq  ;;  %s243_s20 = smov [#allocation2]   ;;  %vm116_vm2 = vcmask 130048  }
   0x7   :  { %v195_v15 = vpack.c.bf16 %v23_v14, %v22_v13  ;;  %v24_v16 = vld [vmem:[%s331_s1 + $0x40] sm:$0xff]  ;;  %v25_v17 = vld [vmem:[%s331_s1 + $0x48] sm:$0xff]  ;;  %v26_v19 = vld [vmem:[%s331_s1 + $0x50] sm:$0xff]  ;;  %s124_s21 = sshll.u32 %s243_s20, 4  ;;  %s125_s21 = int_to_ptr.vmem [resolvable:$true] %s124_s21 }
   0x8   :  { %190 = vmatpush3.bf16.msra.mxu0 %v189_v8  ;;  %v198_v18 = vpack.c.bf16 %v25_v17, %v24_v16  ;;  %v27_v20 = vld [vmem:[%s331_s1 + $0x58] sm:$0xff]  ;;  %v28_v22 = vld [vmem:[%s331_s1 + $0x60] sm:$0xff]  ;;  %v29_v23 = vld [vmem:[%s331_s1 + $0x68] sm:$0xff]  ;;  %v109_v30 = vand.u32 127, %v108_v29  ;;  %p220_p1 = scmp.lt.s32.totalorder %s125_s21, %s125_s21 }
   0x9   :  { %191 = vmatprep.subr.bf16.mxu0 %v239_v3  ;;  %v201_v21 = vpack.c.bf16 %v27_v20, %v26_v19  ;;  %v204_v24 = vpack.c.bf16 %v29_v23, %v28_v22  ;;  %v30_v25 = vld [vmem:[%s331_s1 + $0x70] sm:$0xff]  ;;  %v31_v26 = vld [vmem:[%s331_s1 + $0x78] sm:$0xff]  ;;  %v15_v28 = vld [vmem:[%s330_s0] sm:$0xff]  ;;  %s215_s1 = scalar_lea.vmem %s125_s21, 128 }
   0xa   :  { %v207_v27 = vpack.c.bf16 %v31_v26, %v30_v25  ;;  %p216_p0 = scmp.ne.s32.totalorder %s125_s21, %s215_s1  ;;  %p221_p2 = scmp.lt.s32.totalorder %s215_s1, %s215_s1 }
   0xc   :  { %193 = vmatpush3.bf16.msra.mxu0 %v192_v12  ;;  %p222_p3 = por %p221_p2, %p220_p1 }
   0xd   :  { %194 = vmatprep.subr.bf16.mxu0 %v239_v3 }
   0xe   :  { %p223_p4 = pnand %p222_p3, %p216_p0 }
  0x10   :  { %196 = vmatpush3.bf16.msra.mxu0 %v195_v15 }
  0x11   :  { %197 = vmatprep.subr.bf16.mxu0 %v239_v3 }
  0x14   :  { %199 = vmatpush3.bf16.msra.mxu0 %v198_v18 }
  0x15   :  { %200 = vmatprep.subr.bf16.mxu0 %v239_v3 }
  0x18   :  { %202 = vmatpush3.bf16.msra.mxu0 %v201_v21 }
  0x19   :  { %203 = vmatprep.subr.bf16.mxu0 %v239_v3 }
  0x1c   :  { %205 = vmatpush3.bf16.msra.mxu0 %v204_v24 }
  0x1d   :  { %206 = vmatprep.subr.bf16.mxu0 %v239_v3 }
  0x20   :  { %208 = vmatpush3.bf16.msra.mxu0 %v207_v27 }
  0x23   :  { %183 = vmatmul.mubr.f32.vlgmr.msra.gmra.mrb[0].mxu0 %v15_v28 }
  0x83   :  { %v112_v31 = vpop.permute.xlu0 %111 }
  0x84   :  { %vm113_vm1 = vcmp.eq.s32.totalorder %v112_v31, %v109_v30 }
  0x85   :  { %v114_v32 = vsel %vm113_vm1, 12.0, %v241_v6 }
  0xf6   :  { %v98_v33 = vpop.f32.mrb[0].mxu0 }
  0xf7   :  { %v132_v34 = vclamps-f32 %v98_v33, 30.0  ;;  %v184_v35 = vpop.f32.mrb[1].mxu0 }
  0xf9   :  { %v115_v36 = vsub.f32 %v132_v34, %v114_v32 }
  0xfb   :  { %117 = vst.msk [vmem:[#allocation2] sm:$0xff] %vm116_vm2, %v115_v36 }
  0xfc   :  { %226 = shalt.err (!%p223_p4)
}
  0xfd   :  { %s227_s23 = scalar_lea.hbm %s333_s3, 128 }
  0xfe   :  { %p228_p5 = scmp.ne.s32.totalorder %s333_s3, %s227_s23  ;;  %p231_p6 = scmp.lt.u32.totalorder %s227_s23, %s333_s3 }
 0x100   :  { %p233_p7 = pnand %p231_p6, %p228_p5 }
 0x102   :  { %236 = shalt.err (!%p233_p7)
}
 0x103   :  { %127 = dma.vmem_to_hbm [thread:$0]  %s125_s21, 128, %s333_s3, [#allocation3]  }
 0x104   :  { %237 = dma.done.wait [#allocation3], 128  }
 0x105   :  { %238 = vsyncadd [#allocation3], 4294967168 }
 0x106   :  { %131 = vsyncpa [#allocation3], 1 }

</bundles_post_ra>
